<compile_context>
chip_gen: v7x
topology: tpu7x:2x2x1
jax: 0.10.0
libtpu: 0.0.40
codegen_flags: <defaults>
</compile_context>

<pallas_src>
import jax
import jax.numpy as jnp
from jax.experimental import pallas as pl
from jax.experimental.pallas import tpu as pltpu


def _round_up(x, m):
    return ((x + m - 1) // m) * m


def _divisors(n):
    return [d for d in range(1, n + 1) if n % d == 0]


def _vmem_capacity_bytes():
    """Physical VMEM per TensorCore; falls back to 128 MiB if the query fails."""
    try:
        info = pltpu.get_tpu_info()
        cap = int(getattr(info, "vmem_capacity_bytes", 0) or 0)
        if cap > 0:
            return cap
    except Exception:
        pass
    return 128 * 1024 * 1024


# ----------------------------------------------------------------------------
# Plain-JAX glue: sampling / grouping (data-dependent gathers, not the hot path)
# ----------------------------------------------------------------------------

def farthest_point_sample(xyz, K):
    """xyz: (B, N, 3) -> (new_xyz (B, K, 3), idx (B, K)); deterministic start at 0."""
    B, N, _ = xyz.shape

    def body(i, state):
        min_d2, farthest, idxs = state
        idxs = idxs.at[:, i].set(farthest)
        centroid = jnp.take_along_axis(
            xyz, jnp.broadcast_to(farthest[:, None, None], (B, 1, 3)), axis=1)
        d2 = jnp.sum((xyz - centroid) ** 2, axis=-1)
        min_d2 = jnp.minimum(min_d2, d2)
        farthest = jnp.argmax(min_d2, axis=-1).astype(jnp.int32)
        return min_d2, farthest, idxs

    init = (jnp.full((B, N), 1e10, jnp.float32),
            jnp.zeros((B,), jnp.int32),
            jnp.zeros((B, K), jnp.int32))
    _, _, idxs = jax.lax.fori_loop(0, K, body, init)
    new_xyz = jnp.take_along_axis(
        xyz, jnp.broadcast_to(idxs[..., None], (B, K, 3)), axis=1)
    return new_xyz, idxs


def gather_points(points, idx):
    """points: (B, N, C), idx: (B, S, K) non-negative int32 -> (B, S, K, C)."""
    B, N, C = points.shape
    _, S, K = idx.shape
    flat = idx.reshape(B, S * K)
    out = jnp.take_along_axis(
        points, jnp.broadcast_to(flat[..., None], (B, S * K, C)), axis=1)
    return out.reshape(B, S, K, C)


def ball_query(new_xyz, xyz, K, radius):
    """pytorch3d-style ball query: first K in-radius indices (ascending), -1 fill."""
    B, S, _ = new_xyz.shape
    N = xyz.shape[1]
    d2 = jnp.sum((new_xyz[:, :, None, :] - xyz[:, None, :, :]) ** 2, axis=-1)  # (B,S,N)
    mask = d2 < radius * radius
    iota = jnp.arange(N, dtype=jnp.int32)
    key = jnp.where(mask, -iota, jnp.int32(-N - 1))
    _, order = jax.lax.top_k(key, K)                    # first K in-radius indices
    counts = jnp.sum(mask, axis=-1)
    valid = jnp.arange(K)[None, None, :] < counts[:, :, None]
    return jnp.where(valid, order.astype(jnp.int32), -1)


# ----------------------------------------------------------------------------
# Pallas kernel: per-point MLP (1x1 convs, BN folded) + ReLU + streamed max-pool
# ----------------------------------------------------------------------------

def _make_mlp_maxpool_kernel(num_layers, cout, dense_out):
    """Kernel over grid (B/tB, S/tS, Kp/kc).  The k axis streams the neighborhood:
    the running max lives in acc_ref (VMEM scratch) and is written out on the last k."""

    def kernel(x_ref, *rest):
        acc_ref = rest[-1]
        out_ref = rest[-2]
        params = rest[:-2]
        k_idx = pl.program_id(2)

        @pl.when(k_idx == 0)
        def _init():
            acc_ref[...] = jnp.zeros_like(acc_ref)      # ReLU output >= 0, so 0 is exact

        x = x_ref[...]                                  # (tB, tS, kc, C0p) bf16
        tb, ts, kc, c0 = x.shape
        h = x.reshape(tb * ts * kc, c0)
        for i in range(num_layers):
            w = params[2 * i][...]                      # (Cprev_p, Cp) bf16, BN folded
            b = params[2 * i + 1][...]                  # (1, Cp) f32
            acc = jnp.dot(h, w, preferred_element_type=jnp.float32)   # MXU, f32 accum
            act = jnp.maximum(acc + b, 0.0)             # bias + ReLU on the VPU
            h = act if i == num_layers - 1 else act.astype(jnp.bfloat16)
        cp = h.shape[-1]
        chunk_max = jnp.max(h.reshape(tb, ts, kc, cp), axis=2)        # (tB, tS, Cp)
        acc_ref[...] = jnp.maximum(acc_ref[...], chunk_max)

        @pl.when(k_idx == pl.num_programs(2) - 1)
        def _finalize():
            if dense_out:
                # Emit the PyTorch (B, Cout, S) layout directly, only real channels.
                for bi in range(tb):
                    out_ref[bi] = acc_ref[bi].T[:cout]  # (Cout, tS)
            else:
                out_ref[...] = acc_ref[...][..., :cout]

    return kernel


def _choose_tiles(B, S, Kp, widths_p, budget):
    """Pick (tB, tS, kc): fit `budget` VMEM, prefer >=2 parallel grid steps (megacore),
    lane-friendly output tiles, and big matmul row counts."""
    c0_lane = _round_up(widths_p[0], 128)   # last dim is lane-padded inside VMEM
    max_cp = max(widths_p[1:])
    cout_p = widths_p[-1]

    def vmem_use(tb, ts, kc):
        rows = tb * ts
        in_blk = rows * kc * c0_lane * 2 * 2          # bf16 input block, double-buffered
        act = rows * kc * max_cp * 8                  # f32 activations + bf16 copies
        accs = rows * cout_p * 4 * 3                  # acc scratch + out block(s)
        return in_blk + act + accs

    kcands = [d for d in _divisors(Kp) if d % 16 == 0]
    best_fit = None
    best_any = None
    for tb in _divisors(B):
        for ts in _divisors(S):
            if ts % 8 != 0 and ts != S:               # output-block layout constraint
                continue
            for kc in kcands:
                use = vmem_use(tb, ts, kc)
                par = (B // tb) * (S // ts)
                steps = par * (Kp // kc)
                rows = tb * ts * kc
                dense = (ts % 128 == 0) or (ts == S and ts % 8 == 0)
                score = (1 if par >= 2 else 0,
                         1 if steps >= 2 else 0,
                         1 if dense else 0,
                         min(rows, 8192),
                         min(par, 8),
                         rows)
                if use <= budget and (best_fit is None or score > best_fit[0]):
                    best_fit = (score, (tb, ts, kc))
                if best_any is None or use < best_any[0]:
                    best_any = (use, (tb, ts, kc))
    return best_fit[1] if best_fit is not None else best_any[1]


def mlp_maxpool_pallas(x, weights, biases, cout):
    """x: (B, S, Kp, C0p) bf16 (C0p multiple of 8, Kp multiple of 16);
    weights[i]: (C_{i-1}p, C_i p) bf16 (BN scale folded in); biases[i]: (1, C_i p) f32.
    Returns (B, cout, S) f32 (PyTorch channel-first layout)."""
    B, S, Kp, C0p = x.shape
    num_layers = len(weights)
    widths_p = [C0p] + [w.shape[1] for w in weights]
    cout_p = widths_p[-1]

    vmem_cap = _vmem_capacity_bytes()
    budget = vmem_cap // 6                       # ~21 MiB on 128 MiB parts, ~10 MiB on v7x
    tB, tS, kc = _choose_tiles(B, S, Kp, widths_p, budget)
    dense_out = (tS % 128 == 0) or (tS == S and tS % 8 == 0)
    grid = (B // tB, S // tS, Kp // kc)

    param_bytes = sum(int(w.size) * w.dtype.itemsize + int(b.size) * b.dtype.itemsize
                      for w, b in zip(weights, biases))
    # Constant index_map => double-buffering params buys nothing; single-buffer them when
    # they are big enough to matter (keeps the small/common case on the default path).
    single_buf_params = param_bytes >= (1 << 20)

    def _param_spec(shape):
        if single_buf_params:
            return pl.BlockSpec(shape, lambda b_, s_, k_: (0, 0),
                                pipeline_mode=pl.Buffered(1))
        return pl.BlockSpec(shape, lambda b_, s_, k_: (0, 0))

    in_specs = [pl.BlockSpec((tB, tS, kc, C0p), lambda b_, s_, k_: (b_, s_, k_, 0))]
    args = [x]
    for w, bi in zip(weights, biases):
        in_specs.append(_param_spec(w.shape))
        args.append(w)
        in_specs.append(_param_spec(bi.shape))
        args.append(bi)

    if dense_out:
        out_shape = jax.ShapeDtypeStruct((B, cout, S), jnp.float32)
        out_spec = pl.BlockSpec((tB, cout, tS), lambda b_, s_, k_: (b_, 0, s_))
    else:
        out_shape = jax.ShapeDtypeStruct((B, S, cout), jnp.float32)
        out_spec = pl.BlockSpec((tB, tS, cout), lambda b_, s_, k_: (b_, s_, 0))

    rows = tB * tS
    param_resident = param_bytes * (1 if single_buf_params else 2)
    vmem_est = (rows * kc * _round_up(C0p, 128) * 2 * 2
                + rows * kc * max(widths_p[1:]) * 8
                + rows * cout_p * 4 * 3
                + param_resident)
    vmem_limit = int(min(max(2 * vmem_est, 32 * 1024 * 1024), (vmem_cap * 3) // 4))

    flops = 2 * B * S * Kp * sum(w.shape[0] * w.shape[1] for w in weights)
    bytes_accessed = int(x.size) * 2 + param_bytes + B * S * cout * 4

    out = pl.pallas_call(
        _make_mlp_maxpool_kernel(num_layers, cout, dense_out),
        out_shape=out_shape,
        grid=grid,
        in_specs=in_specs,
        out_specs=out_spec,
        scratch_shapes=[pltpu.VMEM((tB, tS, cout_p), jnp.float32)],
        compiler_params=pltpu.CompilerParams(
            dimension_semantics=("parallel", "parallel", "arbitrary"),
            vmem_limit_bytes=vmem_limit),
        cost_estimate=pl.CostEstimate(
            flops=int(flops), transcendentals=0, bytes_accessed=int(bytes_accessed)),
    )(*args)

    if dense_out:
        return out                                     # already (B, Cout, S)
    return jnp.transpose(out, (0, 2, 1))               # group_all-style tiny outputs


# ----------------------------------------------------------------------------
# Module wrapper (deterministic synthetic parameters)
# ----------------------------------------------------------------------------

class PointNetSetAbstractionPallas:
    # TODO(synk): BatchNorm is eval-mode only (running_mean=0, running_var=1 folded with
    # gamma/beta/conv-bias); training-mode batch statistics are not reproduced.
    # TODO(synk): grouped coordinates/features are cast to bf16 before the first matmul;
    # for very large-coordinate scenes use f32 inputs if tighter precision is required.
    def __init__(self, npoint, radius, nsample, in_channel, mlp, group_all, bn=True,
                 key=None):
        self.npoint, self.radius, self.nsample = npoint, radius, nsample
        self.group_all = group_all
        key = jax.random.PRNGKey(0) if key is None else key
        eps = 1e-5
        self.weights_p, self.biases_p = [], []
        last, last_p = in_channel, _round_up(in_channel, 8)   # channels padded to 8 only
        self.c0 = in_channel
        self.c0p = last_p
        for out_c in mlp:
            out_p = _round_up(out_c, 128)
            key, k1, k2, k3, k4 = jax.random.split(key, 5)
            w = jax.random.normal(k1, (last, out_c), jnp.float32) / jnp.sqrt(float(last))
            conv_b = 0.1 * jax.random.normal(k2, (out_c,), jnp.float32)
            if bn:
                gamma = 1.0 + 0.1 * jax.random.normal(k3, (out_c,), jnp.float32)
                beta = 0.1 * jax.random.normal(k4, (out_c,), jnp.float32)
                run_mean = jnp.zeros((out_c,), jnp.float32)
                run_var = jnp.ones((out_c,), jnp.float32)
                scale = gamma / jnp.sqrt(run_var + eps)
                bias = scale * (conv_b - run_mean) + beta
            else:
                scale = jnp.ones((out_c,), jnp.float32)
                bias = conv_b
            w_folded = w * scale[None, :]              # fold BN scale into the conv weight
            w_pad = jnp.zeros((last_p, out_p), jnp.float32).at[:last, :out_c].set(w_folded)
            b_pad = jnp.zeros((1, out_p), jnp.float32).at[:, :out_c].set(bias[None, :])
            self.weights_p.append(w_pad.astype(jnp.bfloat16))
            self.biases_p.append(b_pad)
            last, last_p = out_c, out_p
        self.cout, self.cout_p = last, last_p

    def group_padded(self, xyz, points):
        """xyz: (B, 3, N), points: (B, D, N) or None (PyTorch channel-first).
        Returns new_xyz (B, S, 3) f32 and the kernel-ready grouped tensor
        (B, S, Kp, C0p) bf16 (Kp = nsample rounded to 16 via duplicated neighbor 0,
        channels zero-padded to a multiple of 8)."""
        xyz_t = jnp.transpose(xyz, (0, 2, 1))                       # (B, N, 3)
        pts_t = None if points is None else jnp.transpose(points, (0, 2, 1))
        B, N, _ = xyz_t.shape

        if self.group_all:
            new_xyz = jnp.zeros((B, 1, 3), jnp.float32)
            parts = [xyz_t.astype(jnp.bfloat16)]
            c0 = 3
            if pts_t is not None:
                parts.append(pts_t.astype(jnp.bfloat16))
                c0 += pts_t.shape[-1]
            if self.c0p > c0:
                parts.append(jnp.zeros((B, N, self.c0p - c0), jnp.bfloat16))
            x = jnp.concatenate(parts, axis=-1)[:, None]            # (B, 1, N, C0p)
            Kp = _round_up(N, 16)
            if Kp > N:
                x = jnp.concatenate(
                    [x, jnp.broadcast_to(x[:, :, :1, :], (B, 1, Kp - N, self.c0p))],
                    axis=2)
            return new_xyz, x

        S, K = self.npoint, self.nsample
        Kp = _round_up(K, 16)
        new_xyz, _ = farthest_point_sample(xyz_t, S)
        idx = ball_query(new_xyz, xyz_t, K, self.radius)            # (B, S, K), -1 = hole
        if Kp > K:
            # Pad nsample by duplicating neighbor 0 (max-pool invariant).
            idx = jnp.concatenate(
                [idx, jnp.broadcast_to(idx[:, :, :1], (B, S, Kp - K))], axis=2)
        valid = idx >= 0
        # Matches the reference module: pytorch3d ball_query zero-fills grouped xyz for
        # holes, while index_points with idx=-1 wraps to point N-1's features.
        safe_idx = jnp.where(valid, idx, 0)
        gxyz = gather_points(xyz_t, safe_idx)                       # (B, S, Kp, 3) f32
        gxyz = jnp.where(valid[..., None], gxyz, 0.0)
        gnorm = (gxyz - new_xyz[:, :, None, :]).astype(jnp.bfloat16)
        parts = [gnorm]
        c0 = 3
        if pts_t is not None:
            feat_idx = jnp.where(valid, idx, N - 1)                 # torch -1 wrap
            parts.append(gather_points(pts_t.astype(jnp.bfloat16), feat_idx))
            c0 += pts_t.shape[-1]
        if self.c0p > c0:
            parts.append(jnp.zeros((B, S, Kp, self.c0p - c0), jnp.bfloat16))
        x = jnp.concatenate(parts, axis=-1)                         # (B, S, Kp, C0p) bf16
        return new_xyz, x

    def mlp_maxpool(self, x):
        return mlp_maxpool_pallas(x, self.weights_p, self.biases_p, self.cout)

    def mlp_maxpool_reference(self, x):
        """Plain-JAX reference with identical numerics (bf16 matmuls, f32 accumulation).
        x: (B, S, Kp, C0p) bf16 -> (B, S, cout) f32."""
        h = x
        n = len(self.weights_p)
        for i, (w, b) in enumerate(zip(self.weights_p, self.biases_p)):
            acc = jnp.einsum("bskc,cd->bskd", h, w, preferred_element_type=jnp.float32)
            act = jnp.maximum(acc + b, 0.0)
            h = act if i == n - 1 else act.astype(jnp.bfloat16)
        return jnp.max(h, axis=2)[:, :, :self.cout]

    def __call__(self, xyz, points):
        new_xyz, x = self.group_padded(xyz, points)                 # (B,S,3), (B,S,Kp,C0p)
        feats = self.mlp_maxpool(x)                                 # (B, Cout, S)
        return jnp.transpose(new_xyz, (0, 2, 1)), feats


if __name__ == "__main__":
    key = jax.random.PRNGKey(0)
    B, N, D = 2, 32, 4
    npoint, nsample, radius = 8, 8, 0.8
    k1, k2 = jax.random.split(key)
    xyz = jax.random.uniform(k1, (B, 3, N), jnp.float32)      # positions, channel-first
    points = jax.random.normal(k2, (B, D, N), jnp.float32)    # features, channel-first

    module = PointNetSetAbstractionPallas(
        npoint=npoint, radius=radius, nsample=nsample,
        in_channel=3 + D, mlp=[16, 32], group_all=False, bn=True,
        key=jax.random.PRNGKey(42))

    fwd = jax.jit(lambda a, b: module(a, b))
    new_xyz, new_feats = fwd(xyz, points)
    jax.block_until_ready((new_xyz, new_feats))
    assert new_xyz.shape == (B, 3, npoint), new_xyz.shape
    assert new_feats.shape == (B, 32, npoint), new_feats.shape

    # Check the Pallas hot path against a plain-JAX reference with matching numerics.
    _, x_prep = module.group_padded(xyz, points)
    ref = jnp.transpose(module.mlp_maxpool_reference(x_prep), (0, 2, 1))
    err = jnp.max(jnp.abs(ref - new_feats))
    assert err < 1e-2, f"max abs err {err}"

    # group_all path (S=1, K=N) smoke test.
    module_all = PointNetSetAbstractionPallas(
        npoint=None, radius=None, nsample=None,
        in_channel=3 + D, mlp=[16, 32], group_all=True, bn=True,
        key=jax.random.PRNGKey(7))
    fwd_all = jax.jit(lambda a, b: module_all(a, b))
    gx, gf = fwd_all(xyz, points)
    jax.block_until_ready((gx, gf))
    assert gx.shape == (B, 3, 1) and gf.shape == (B, 32, 1), (gx.shape, gf.shape)
    _, xa = module_all.group_padded(xyz, points)
    ref_all = jnp.transpose(module_all.mlp_maxpool_reference(xa), (0, 2, 1))
    err_all = jnp.max(jnp.abs(ref_all - gf))
    assert err_all < 1e-2, f"group_all max abs err {err_all}"

    print("KERNEL_OK")
</pallas_src>

<mosaic_0001>
module attributes {stable_mosaic.version = 11 : i64} {
  func.func @kernel(%arg0: i32, %arg1: i32, %arg2: i32, %arg3: memref<1x8x16x8xbf16, #tpu.memory_space<vmem>>, %arg4: memref<8x128xbf16, #tpu.memory_space<vmem>>, %arg5: memref<1x128xf32, #tpu.memory_space<vmem>>, %arg6: memref<128x128xbf16, #tpu.memory_space<vmem>>, %arg7: memref<1x128xf32, #tpu.memory_space<vmem>>, %arg8: memref<1x32x8xf32, #tpu.memory_space<vmem>>, %arg9: memref<1x8x128xf32, #tpu.memory_space<vmem>>) attributes {dimension_semantics = [#tpu.dimension_semantics<parallel>, #tpu.dimension_semantics<parallel>, #tpu.dimension_semantics<arbitrary>], iteration_bounds = array<i64: 2, 1, 1>, scalar_prefetch = 0 : i64, scratch_operands = 1 : i64, tpu.core_type = #tpu.core_type<tc>, window_params = [{transform_indices = @transform_0, window_bounds = array<i64: 1, 8, 16, 8>}, {pipeline_mode = #tpu.pipeline_mode<synchronous>, transform_indices = @transform_1, window_bounds = array<i64: 8, 128>}, {pipeline_mode = #tpu.pipeline_mode<synchronous>, transform_indices = @transform_2, window_bounds = array<i64: 1, 128>}, {pipeline_mode = #tpu.pipeline_mode<synchronous>, transform_indices = @transform_3, window_bounds = array<i64: 128, 128>}, {pipeline_mode = #tpu.pipeline_mode<synchronous>, transform_indices = @transform_4, window_bounds = array<i64: 1, 128>}, {transform_indices = @transform_5, window_bounds = array<i64: 1, 32, 8>}]} {
    %c0_i32 = arith.constant 0 : i32
    %0 = arith.cmpi eq, %arg2, %c0_i32 : i32
    %1 = arith.extui %0 : i1 to i32
    %c0_i32_0 = arith.constant 0 : i32
    %2 = arith.cmpi ne, %1, %c0_i32_0 : i32
    scf.if %2 {
      %cst_24 = arith.constant 0.000000e+00 : f32
      %28 = vector.broadcast %cst_24 : f32 to vector<1x8x128xf32>
      %c0_25 = arith.constant 0 : index
      %c0_26 = arith.constant 0 : index
      %c0_27 = arith.constant 0 : index
      %29 = vector.load %arg9[%c0_25, %c0_26, %c0_27] : memref<1x8x128xf32, #tpu.memory_space<vmem>>, vector<1x8x128xf32>
      tpu.vector_store %arg9[%c0_25, %c0_26, %c0_27], %28 {strides = array<i32>} : memref<1x8x128xf32, #tpu.memory_space<vmem>>, vector<1x8x128xf32>,
    } else {
    }
    %c0 = arith.constant 0 : index
    %c0_1 = arith.constant 0 : index
    %c0_2 = arith.constant 0 : index
    %c0_3 = arith.constant 0 : index
    %3 = vector.load %arg3[%c0, %c0_1, %c0_2, %c0_3] : memref<1x8x16x8xbf16, #tpu.memory_space<vmem>>, vector<1x8x16x8xbf16>
    %4 = vector.shape_cast %3 : vector<1x8x16x8xbf16> to vector<128x8xbf16>
    %c0_4 = arith.constant 0 : index
    %c0_5 = arith.constant 0 : index
    %5 = vector.load %arg4[%c0_4, %c0_5] : memref<8x128xbf16, #tpu.memory_space<vmem>>, vector<8x128xbf16>
    %c0_6 = arith.constant 0 : index
    %c0_7 = arith.constant 0 : index
    %6 = vector.load %arg5[%c0_6, %c0_7] : memref<1x128xf32, #tpu.memory_space<vmem>>, vector<1x128xf32>
    %cst = arith.constant dense<0.000000e+00> : vector<128x128xf32>
    %7 = tpu.matmul %4, %5, %cst {dimension_numbers = #tpu.dot_dimension_numbers<[1], [0], [0], [1], [0, 0, 1, 1], [], []>} : vector<128x8xbf16>, vector<8x128xbf16>, vector<128x128xf32> -> vector<128x128xf32>
    %8 = vector.broadcast %6 : vector<1x128xf32> to vector<128x128xf32>
    %9 = arith.addf %7, %8 : vector<128x128xf32>
    %cst_8 = arith.constant 0.000000e+00 : f32
    %10 = vector.broadcast %cst_8 : f32 to vector<128x128xf32>
    %11 = arith.maximumf %9, %10 : vector<128x128xf32>
    %12 = arith.truncf %11 : vector<128x128xf32> to vector<128x128xbf16>
    %c0_9 = arith.constant 0 : index
    %c0_10 = arith.constant 0 : index
    %13 = vector.load %arg6[%c0_9, %c0_10] : memref<128x128xbf16, #tpu.memory_space<vmem>>, vector<128x128xbf16>
    %c0_11 = arith.constant 0 : index
    %c0_12 = arith.constant 0 : index
    %14 = vector.load %arg7[%c0_11, %c0_12] : memref<1x128xf32, #tpu.memory_space<vmem>>, vector<1x128xf32>
    %cst_13 = arith.constant dense<0.000000e+00> : vector<128x128xf32>
    %15 = tpu.matmul %12, %13, %cst_13 {dimension_numbers = #tpu.dot_dimension_numbers<[1], [0], [0], [1], [0, 0, 1, 1], [], []>} : vector<128x128xbf16>, vector<128x128xbf16>, vector<128x128xf32> -> vector<128x128xf32>
    %16 = vector.broadcast %14 : vector<1x128xf32> to vector<128x128xf32>
    %17 = arith.addf %15, %16 : vector<128x128xf32>
    %cst_14 = arith.constant 0.000000e+00 : f32
    %18 = vector.broadcast %cst_14 : f32 to vector<128x128xf32>
    %19 = arith.maximumf %17, %18 : vector<128x128xf32>
    %20 = vector.shape_cast %19 : vector<128x128xf32> to vector<1x8x16x128xf32>
    %cst_15 = arith.constant dense<0xFF800000> : vector<1x8x128xf32>
    %21 = vector.multi_reduction <maximumf>, %20, %cst_15 [2] : vector<1x8x16x128xf32> to vector<1x8x128xf32>
    %c0_16 = arith.constant 0 : index
    %c0_17 = arith.constant 0 : index
    %c0_18 = arith.constant 0 : index
    %22 = vector.load %arg9[%c0_16, %c0_17, %c0_18] : memref<1x8x128xf32, #tpu.memory_space<vmem>>, vector<1x8x128xf32>
    %23 = arith.maximumf %22, %21 : vector<1x8x128xf32>
    %c0_19 = arith.constant 0 : index
    %c0_20 = arith.constant 0 : index
    %c0_21 = arith.constant 0 : index
    %24 = vector.load %arg9[%c0_19, %c0_20, %c0_21] : memref<1x8x128xf32, #tpu.memory_space<vmem>>, vector<1x8x128xf32>
    tpu.vector_store %arg9[%c0_19, %c0_20, %c0_21], %23 {strides = array<i32>} : memref<1x8x128xf32, #tpu.memory_space<vmem>>, vector<1x8x128xf32>,
    %c0_i32_22 = arith.constant 0 : i32
    %25 = arith.cmpi eq, %arg2, %c0_i32_22 : i32
    %26 = arith.extui %25 : i1 to i32
    %c0_i32_23 = arith.constant 0 : i32
    %27 = arith.cmpi ne, %26, %c0_i32_23 : i32
    scf.if %27 {
      %c0_24 = arith.constant 0 : index
      %c0_25 = arith.constant 0 : index
      %c0_26 = arith.constant 0 : index
      %28 = vector.load %arg9[%c0_24, %c0_25, %c0_26] : memref<1x8x128xf32, #tpu.memory_space<vmem>>, vector<1x8x128xf32>
      %29 = vector.shape_cast %28 : vector<1x8x128xf32> to vector<8x128xf32>
      %30 = tpu.transpose %29, [1, 0] : vector<8x128xf32> -> vector<128x8xf32>
      %31 = vector.extract_strided_slice %30 {offsets = [0, 0], sizes = [32, 8], strides = [1, 1]} : vector<128x8xf32> to vector<32x8xf32>
      %c0_27 = arith.constant 0 : index
      %c0_28 = arith.constant 0 : index
      %c0_29 = arith.constant 0 : index
      %32 = vector.load %arg8[%c0_27, %c0_28, %c0_29] : memref<1x32x8xf32, #tpu.memory_space<vmem>>, vector<1x32x8xf32>
      %33 = vector.shape_cast %32 : vector<1x32x8xf32> to vector<32x8xf32>
      %34 = vector.shape_cast %31 : vector<32x8xf32> to vector<1x32x8xf32>
      tpu.vector_store %arg8[%c0_27, %c0_28, %c0_29], %34 {strides = array<i32>} : memref<1x32x8xf32, #tpu.memory_space<vmem>>, vector<1x32x8xf32>,
    } else {
    }
    return
  }
  func.func @transform_0(%arg0: i32, %arg1: i32, %arg2: i32) -> (i32, i32, i32, i32) {
    %c0_i32 = arith.constant 0 : i32
    %c0_i32_0 = arith.constant 0 : i32
    return %arg0, %arg1, %arg2, %c0_i32 : i32, i32, i32, i32
  }
  func.func @transform_1(%arg0: i32, %arg1: i32, %arg2: i32) -> (i32, i32) {
    %c0_i32 = arith.constant 0 : i32
    %c0_i32_0 = arith.constant 0 : i32
    %c0_i32_1 = arith.constant 0 : i32
    return %c0_i32, %c0_i32_0 : i32, i32
  }
  func.func @transform_2(%arg0: i32, %arg1: i32, %arg2: i32) -> (i32, i32) {
    %c0_i32 = arith.constant 0 : i32
    %c0_i32_0 = arith.constant 0 : i32
    %c0_i32_1 = arith.constant 0 : i32
    return %c0_i32, %c0_i32_0 : i32, i32
  }
  func.func @transform_3(%arg0: i32, %arg1: i32, %arg2: i32) -> (i32, i32) {
    %c0_i32 = arith.constant 0 : i32
    %c0_i32_0 = arith.constant 0 : i32
    %c0_i32_1 = arith.constant 0 : i32
    return %c0_i32, %c0_i32_0 : i32, i32
  }
  func.func @transform_4(%arg0: i32, %arg1: i32, %arg2: i32) -> (i32, i32) {
    %c0_i32 = arith.constant 0 : i32
    %c0_i32_0 = arith.constant 0 : i32
    %c0_i32_1 = arith.constant 0 : i32
    return %c0_i32, %c0_i32_0 : i32, i32
  }
  func.func @transform_5(%arg0: i32, %arg1: i32, %arg2: i32) -> (i32, i32, i32) {
    %c0_i32 = arith.constant 0 : i32
    %c0_i32_0 = arith.constant 0 : i32
    return %arg0, %c0_i32, %arg1 : i32, i32, i32
  }
}

</mosaic_0001>

<bundles_post_ra>
// kernel: custom-call.8
= control target key start
LH: loop header
LB: loop body
LE: loop exit
PB: predicated region body
PF: predicated region fallthrough
CT: control target
= control target key end

     0   :  { %s6_s0 = inlined_call_operand.vmem [shape: f32[2,32], index: 0, kind: output, shape index: {}]  }

// kernel: _lambda_.1
= control target key start
LH: loop header
LB: loop body
LE: loop exit
PB: predicated region body
PF: predicated region fallthrough
CT: control target
= control target key end

     0   :  { %s1131_s18 = smov 0   ;;  %s1133_s19 = smov 0   ;;  %s1241_s0 = inlined_call_operand.vmem [shape: bf16[2,8,16,8], index: 0, kind: input, shape index: {}]   ;;  %s1242_s1 = inlined_call_operand.vmem [shape: bf16[8,128], index: 1, kind: input, shape index: {}]   ;;  %s1243_s2 = inlined_call_operand.vmem [shape: f32[1,128], index: 2, kind: input, shape index: {}]   ;;  %s1244_s3 = inlined_call_operand.vmem [shape: bf16[128,128], index: 3, kind: input, shape index: {}]   ;;  %s1245_s4 = inlined_call_operand.vmem [shape: f32[1,128], index: 4, kind: input, shape index: {}]   ;;  %s1246_s5 = inlined_call_operand.vmem [shape: f32[2,32,8], index: 5, kind: output, shape index: {}]  }
   0x1   :  { %s1135_s20 = smov 0  }
   0x2 LB: > { %s34_s21 = sadd.s32 1, %s1095_s19  ;;  %p909_p0 = scmp.ge.s32.totalorder %s1099_s20, 1  ;;  %s1099_s20 = sphi %s1135_s20, %s15_s20   ;;  %s1095_s19 = sphi %s1133_s19, %s1248_s19   ;;  %s1091_s18 = sphi %s1131_s18, %s1247_s18  }
   0x3   : > { %p36_p1 = scmp.ge.s32.totalorder %s34_s21, 2  ;;  %p223_p2 = scmp.lt.s32.totalorder %s1099_s20, 3 }
   0x5   : > { %s1250_s21 = smov (%p36_p1, %s34_s21), 0  ;;  %p224_p3 = pnand %p909_p0, %p223_p2 }
   0x6   : > { %v309_v0 = vld [vmem:[%s1242_s1] sm:$0xf] (!%p224_p3)  ;;  %vm382_vm0 = vcmask (!%p224_p3), 1043456   ;;  %p265_p4 = scmp.lt.s32.totalorder (!%p224_p3), %s1091_s18, 1  ;;  %v1070_v3 = vld [vmem:[%s1244_s3 + $0x8] sm:$0xff] (!%p224_p3)   ;;  %vm357_vm1 = vcmask (!%p224_p3), 64512  }
   0x7   : > { %227 = sbr.rel (%p224_p3) target bundleno = 644 (0x284), region = 40  ;;  %v1069_v1 = vld [vmem:[%s1244_s3] sm:$0xff] (!%p224_p3)   ;;  %1035 = vmatprep.subr.msk.bf16.mxu0 (!%p224_p3), %vm382_vm0, %v309_v0  ;;  %v384_v2 = vsel (!%p224_p3), %vm382_vm0, %v309_v0, 0  ;;  %v1071_v4 = vld [vmem:[%s1244_s3 + $0x10] sm:$0xff] (!%p224_p3)   ;;  %v1072_v8 = vld [vmem:[%s1244_s3 + $0x18] sm:$0xff] (!%p224_p3)   ;;  %vm756_vm2 = vcmask (!%p224_p3), 1041409  }
   0x8   : > { %970 = vmatpush3.bf16.msra.mxu0 (!%p224_p3), %v384_v2  ;;  %1019 = vmatprep.subr.bf16.mxu1 (!%p224_p3), %v1069_v1  ;;  %v1073_v9 = vld [vmem:[%s1244_s3 + $0x20] sm:$0xff] (!%p224_p3)   ;;  %v1074_v12 = vld [vmem:[%s1244_s3 + $0x28] sm:$0xff] (!%p224_p3)   ;;  %v1075_v16 = vld [vmem:[%s1244_s3 + $0x30] sm:$0xff] (!%p224_p3)   ;;  %vm758_vm3 = vcmask (!%p224_p3), 1042434   ;;  %vm760_vm4 = vcmask (!%p224_p3), 1043459   ;;  %vm762_vm5 = vcmask (!%p224_p3), 1044484  }
   0x9   : > { %987 = vmatprep.subr.bf16.mxu0 (!%p224_p3), %v1069_v1  ;;  %1027 = vmatpush3.bf16.msra.mxu1 (!%p224_p3), %v1069_v1  ;;  %v1076_v17 = vld [vmem:[%s1244_s3 + $0x38] sm:$0xff] (!%p224_p3)   ;;  %v914_v18 = vld [vmem:[%s1243_s2] ss:$0 sm:$0xff] (!%p224_p3)  ;;  %vm764_vm6 = vcmask (!%p224_p3), 1045509   ;;  %vm766_vm7 = vcmask (!%p224_p3), 1046534   ;;  %vm768_vm8 = vcmask (!%p224_p3), 1047559  }
   0xa   : > { %1020 = vmatprep.subr.bf16.mxu1 (!%p224_p3), %v1070_v3 }
   0xd   : > { %1028 = vmatpush3.bf16.msra.mxu1 (!%p224_p3), %v1070_v3 }
   0xe   : > { %s1252_s18 = smov (!%p265_p4, %s1091_s18), 1  ;;  %1021 = vmatprep.subr.bf16.mxu1 %v1071_v4 }
   0xf   : > { %s942_s28 = sshll.u32 %s1252_s18, 6  ;;  %s943_s27 = sshll.u32 %s1252_s18, 5 }
  0x10   : > { %s1164_s6 = scalar_lea.vmem %s1241_s0, %s942_s28  ;;  %s286_s30 = scalar_lea.vmem %s1246_s5, %s943_s27 }
  0x11   : > { %v1061_v5 = vld [vmem:[%s1164_s6] sm:$0xff]   ;;  %v1062_v6 = vld [vmem:[%s1164_s6 + $0x8] sm:$0xff]   ;;  %v1063_v7 = vld [vmem:[%s1164_s6 + $0x10] sm:$0xff]   ;;  %1029 = vmatpush3.bf16.msra.mxu1 %v1071_v4 }
  0x12   : > { %971 = vmatprep.mubr.msk.bf16.mxu0 %vm357_vm1, %v1061_v5  ;;  %1022 = vmatprep.subr.bf16.mxu1 %v1072_v8  ;;  %v1064_v10 = vld [vmem:[%s1164_s6 + $0x18] sm:$0xff]   ;;  %v1065_v11 = vld [vmem:[%s1164_s6 + $0x20] sm:$0xff]   ;;  %v1066_v13 = vld [vmem:[%s1164_s6 + $0x28] sm:$0xff]  }
  0x13   : > { %972 = vmatmul.mubr.msk.bf16.vlgmr.msra.gmra.mrb[0].mxu0 %vm357_vm1, %v1062_v6  ;;  %v1067_v14 = vld [vmem:[%s1164_s6 + $0x30] sm:$0xff]   ;;  %v1068_v15 = vld [vmem:[%s1164_s6 + $0x38] sm:$0xff]  }
  0x14   : > { %975 = vmatprep.mubr.msk.bf16.mxu0 %vm357_vm1, %v1063_v7  ;;  %988 = vmatpush3.bf16.msra.mxu0 %v1069_v1 }
  0x15   : > { %989 = vmatprep.subr.bf16.mxu0 %v1070_v3  ;;  %1030 = vmatpush3.bf16.msra.mxu1 %v1072_v8 }
  0x16   : > { %1023 = vmatprep.subr.bf16.mxu1 %v1073_v9 }
  0x18   : > { %990 = vmatpush3.bf16.msra.mxu0 %v1070_v3 }
  0x19   : > { %991 = vmatprep.subr.bf16.mxu0 %v1071_v4  ;;  %1031 = vmatpush3.bf16.msra.mxu1 %v1073_v9 }
  0x1a   : > { %1024 = vmatprep.subr.bf16.mxu1 %v1074_v12 }
  0x1b   : > { %976 = vmatmul.mubr.msk.bf16.gmra.mrb[4].mxu0 %vm357_vm1, %v1064_v10 }
  0x1c   : > { %979 = vmatprep.mubr.msk.bf16.mxu0 %vm357_vm1, %v1065_v11  ;;  %992 = vmatpush3.bf16.msra.mxu0 %v1071_v4  ;;  %v1206_v11 = vld [vmem:[%s1245_s4] ss:$0 sm:$0xff] }
  0x1d   : > { %993 = vmatprep.subr.bf16.mxu0 %v1072_v8  ;;  %1032 = vmatpush3.bf16.msra.mxu1 %v1074_v12 }
  0x1e   : > { %1025 = vmatprep.subr.bf16.mxu1 %v1075_v16 }
  0x20   : > { %994 = vmatpush3.bf16.msra.mxu0 %v1072_v8 }
  0x21   : > { %995 = vmatprep.subr.bf16.mxu0 %v1073_v9  ;;  %1033 = vmatpush3.bf16.msra.mxu1 %v1075_v16 }
  0x22   : > { %1026 = vmatprep.subr.bf16.mxu1 %v1076_v17 }
  0x23   : > { %980 = vmatmul.mubr.msk.bf16.gmra.mrb[8].mxu0 %vm357_vm1, %v1066_v13 }
  0x24   : > { %983 = vmatprep.mubr.msk.bf16.mxu0 %vm357_vm1, %v1067_v14  ;;  %996 = vmatpush3.bf16.msra.mxu0 %v1073_v9 }
  0x25   : > { %997 = vmatprep.subr.bf16.mxu0 %v1074_v12  ;;  %1034 = vmatpush3.bf16.msra.mxu1 %v1076_v17 }
  0x28   : > { %998 = vmatpush3.bf16.msra.mxu0 %v1074_v12 }
  0x29   : > { %999 = vmatprep.subr.bf16.mxu0 %v1075_v16 }
  0x2b   : > { %984 = vmatmul.mubr.msk.bf16.gmra.mrb[12].mxu0 %vm357_vm1, %v1068_v15 }
  0x2c   : > { %1000 = vmatpush3.bf16.msra.mxu0 %v1075_v16 }
  0x2d   : > { %1001 = vmatprep.subr.bf16.mxu0 %v1076_v17 }
  0x30   : > { %1002 = vmatpush3.bf16.msra.mxu0 %v1076_v17 }
  0xe6   : > { %v973_v19 = vpop.f32.mrb[0].mxu0 }
  0xe7   : > { %v429_v20 = vadd.f32 %v973_v19, %v914_v18  ;;  %v420_v21 = vpop.f32.mrb[1].mxu0 }
  0xe8   : > { %v421_v22 = vadd.f32 %v914_v18, %v420_v21  ;;  %v974_v23 = vpop.f32.mrb[2].mxu0 }
  0xe9   : > { %v432_v24 = vadd.f32 %v974_v23, %v914_v18  ;;  %v423_v25 = vpop.f32.mrb[3].mxu0  ;;  %v485_v27 = vmax.f32 %v429_v20, 0.0 }
  0xea   : > { %v424_v26 = vadd.f32 %v914_v18, %v423_v25  ;;  %v483_v29 = vmax.f32 %v421_v22, 0.0 }
  0xeb   : > { %v486_v28 = vmax.f32 %v432_v24, 0.0 }
  0xec   : > { %v484_v30 = vmax.f32 %v424_v26, 0.0 }
  0xed   : > { %v500_v31 = vpack.c.bf16 %v486_v28, %v485_v27 }
  0xee   : > { %v499_v32 = vpack.c.bf16 %v484_v30, %v483_v29  ;;  %v977_v33 = vpop.f32.mrb[4].mxu0 }
  0xef   : > { %v445_v34 = vadd.f32 %v977_v33, %v914_v18  ;;  %v436_v35 = vpop.f32.mrb[5].mxu0 }
  0xf0   : > { %v437_v36 = vadd.f32 %v914_v18, %v436_v35  ;;  %v978_v37 = vpop.f32.mrb[6].mxu0  ;;  %1003 = vmatprep.mubr.bf16.mxu0 %v499_v32 }
  0xf1   : > { %v448_v38 = vadd.f32 %v978_v37, %v914_v18  ;;  %v439_v39 = vpop.f32.mrb[7].mxu0  ;;  %1004 = vmatmul.mubr.bf16.vlgmr.msra.gmra.mrb[16].mxu0 %v500_v31  ;;  %v489_v41 = vmax.f32 %v445_v34, 0.0 }
  0xf2   : > { %v440_v40 = vadd.f32 %v914_v18, %v439_v39  ;;  %v487_v43 = vmax.f32 %v437_v36, 0.0 }
  0xf3   : > { %v490_v42 = vmax.f32 %v448_v38, 0.0 }
  0xf4   : > { %v488_v44 = vmax.f32 %v440_v40, 0.0 }
  0xf5   : > { %v502_v45 = vpack.c.bf16 %v490_v42, %v489_v41 }
  0xf6   : > { %v981_v46 = vpop.f32.mrb[8].mxu0  ;;  %v501_v47 = vpack.c.bf16 %v488_v44, %v487_v43 }
  0xf7   : > { %v461_v48 = vadd.f32 %v981_v46, %v914_v18  ;;  %v452_v49 = vpop.f32.mrb[9].mxu0 }
  0xf8   : > { %v453_v50 = vadd.f32 %v914_v18, %v452_v49  ;;  %v982_v51 = vpop.f32.mrb[10].mxu0  ;;  %1007 = vmatprep.mubr.bf16.mxu1 %v501_v47 }
  0xf9   : > { %v464_v52 = vadd.f32 %v982_v51, %v914_v18  ;;  %v455_v53 = vpop.f32.mrb[11].mxu0  ;;  %1008 = vmatmul.mubr.bf16.vlgmr.msra.gmra.mrb[0].mxu1 %v502_v45  ;;  %v493_v55 = vmax.f32 %v461_v48, 0.0 }
  0xfa   : > { %v456_v54 = vadd.f32 %v914_v18, %v455_v53  ;;  %v491_v57 = vmax.f32 %v453_v50, 0.0 }
  0xfb   : > { %v494_v56 = vmax.f32 %v464_v52, 0.0 }
  0xfc   : > { %v492_v58 = vmax.f32 %v456_v54, 0.0 }
  0xfd   : > { %v504_v59 = vpack.c.bf16 %v494_v56, %v493_v55 }
  0xfe   : > { %v503_v60 = vpack.c.bf16 %v492_v58, %v491_v57  ;;  %v985_v61 = vpop.f32.mrb[12].mxu0 }
  0xff   : > { %v477_v62 = vadd.f32 %v985_v61, %v914_v18  ;;  %v468_v63 = vpop.f32.mrb[13].mxu0 }
 0x100   : > { %v469_v0 = vadd.f32 %v914_v18, %v468_v63  ;;  %v986_v1 = vpop.f32.mrb[14].mxu0  ;;  %1011 = vmatprep.mubr.bf16.mxu1 %v503_v60 }
 0x101   : > { %v480_v2 = vadd.f32 %v986_v1, %v914_v18  ;;  %v471_v3 = vpop.f32.mrb[15].mxu0  ;;  %1012 = vmatmul.mubr.bf16.gmra.mrb[4].mxu1 %v504_v59  ;;  %v497_v5 = vmax.f32 %v477_v62, 0.0 }
 0x102   : > { %v472_v4 = vadd.f32 %v914_v18, %v471_v3  ;;  %v495_v7 = vmax.f32 %v469_v0, 0.0 }
 0x103   : > { %v498_v6 = vmax.f32 %v480_v2, 0.0 }
 0x104   : > { %v496_v8 = vmax.f32 %v472_v4, 0.0 }
 0x105   : > { %v506_v9 = vpack.c.bf16 %v498_v6, %v497_v5 }
 0x106   : > { %v505_v10 = vpack.c.bf16 %v496_v8, %v495_v7 }
 0x108   : > { %1015 = vmatprep.mubr.bf16.mxu1 %v505_v10 }
 0x109   : > { %1016 = vmatmul.mubr.bf16.gmra.mrb[8].mxu1 %v506_v9 }
 0x1c4   : > { %v1005_v12 = vpop.f32.mrb[16].mxu0 }
 0x1c5   : > { %v621_v13 = vadd.f32 %v1005_v12, %v1206_v11  ;;  %v612_v14 = vpop.f32.mrb[17].mxu0 }
 0x1c6   : > { %v613_v15 = vadd.f32 %v1206_v11, %v612_v14  ;;  %v1006_v16 = vpop.f32.mrb[18].mxu0 }
 0x1c7   : > { %v624_v17 = vadd.f32 %v1006_v16, %v1206_v11  ;;  %v615_v18 = vpop.f32.mrb[19].mxu0  ;;  %v677_v20 = vmax.f32 %v621_v13, 0.0 }
 0x1c8   : > { %v616_v19 = vadd.f32 %v1206_v11, %v615_v18  ;;  %v675_v22 = vmax.f32 %v613_v15, 0.0 }
 0x1c9   : > { %v678_v21 = vmax.f32 %v624_v17, 0.0 }
 0x1ca   : > { %v676_v23 = vmax.f32 %v616_v19, 0.0 }
 0x1cb   : > { %v698_v24 = vmax.f32 %v677_v20, %v678_v21 }
 0x1cc   : > { %v691_v25 = vmax.f32 %v675_v22, %v676_v23  ;;  %v1009_v26 = vpop.f32.mrb[0].mxu1 }
 0x1cd   : > { %v699_v27 = vrot.slane %v698_v24, 4  ;;  %v637_v28 = vadd.f32 %v1009_v26, %v1206_v11  ;;  %v628_v29 = vpop.f32.mrb[1].mxu1 }
 0x1ce   : > { %v692_v30 = vrot.slane %v691_v25, 4  ;;  %v629_v31 = vadd.f32 %v1206_v11, %v628_v29  ;;  %v1010_v32 = vpop.f32.mrb[2].mxu1 }
 0x1cf   : > { %v700_v33 = vmax.f32 %v698_v24, %v699_v27  ;;  %v640_v34 = vadd.f32 %v1010_v32, %v1206_v11  ;;  %v631_v35 = vpop.f32.mrb[3].mxu1  ;;  %v681_v39 = vmax.f32 %v637_v28, 0.0 }
 0x1d0   : > { %v693_v36 = vmax.f32 %v691_v25, %v692_v30  ;;  %v632_v37 = vadd.f32 %v1206_v11, %v631_v35  ;;  %v679_v42 = vmax.f32 %v629_v31, 0.0 }
 0x1d1   : > { %v701_v38 = vrot.slane %v700_v33, 2  ;;  %v682_v40 = vmax.f32 %v640_v34, 0.0 }
 0x1d2   : > { %v694_v41 = vrot.slane %v693_v36, 2  ;;  %v680_v43 = vmax.f32 %v632_v37, 0.0 }
 0x1d3   : > { %v702_v44 = vmax.f32 %v700_v33, %v701_v38  ;;  %v712_v45 = vmax.f32 %v681_v39, %v682_v40 }
 0x1d4   : > { %v695_v46 = vmax.f32 %v693_v36, %v694_v41  ;;  %v705_v47 = vmax.f32 %v679_v42, %v680_v43  ;;  %v1013_v48 = vpop.f32.mrb[4].mxu1 }
 0x1d5   : > { %v703_v49 = vrot.slane %v702_v44, 1  ;;  %v713_v50 = vrot.slane %v712_v45, 4  ;;  %v653_v51 = vadd.f32 %v1013_v48, %v1206_v11  ;;  %v644_v52 = vpop.f32.mrb[5].mxu1 }
 0x1d6   : > { %v696_v53 = vrot.slane %v695_v46, 1  ;;  %v706_v54 = vrot.slane %v705_v47, 4  ;;  %v645_v55 = vadd.f32 %v1206_v11, %v644_v52  ;;  %v1014_v56 = vpop.f32.mrb[6].mxu1 }
 0x1d7   : > { %v704_v57 = vmax.f32 %v702_v44, %v703_v49  ;;  %v714_v58 = vmax.f32 %v712_v45, %v713_v50  ;;  %v656_v59 = vadd.f32 %v1014_v56, %v1206_v11  ;;  %v647_v60 = vpop.f32.mrb[7].mxu1  ;;  %v685_v1 = vmax.f32 %v653_v51, 0.0 }
 0x1d8   : > { %v697_v61 = vmax.f32 %v695_v46, %v696_v53  ;;  %v707_v62 = vmax.f32 %v705_v47, %v706_v54  ;;  %v648_v63 = vadd.f32 %v1206_v11, %v647_v60  ;;  %v683_v5 = vmax.f32 %v645_v55, 0.0 }
 0x1d9   : > { %v715_v0 = vrot.slane %v714_v58, 2  ;;  %v686_v2 = vmax.f32 %v656_v59, 0.0 }
 0x1da   : > { %v757_v3 = vsel %vm756_vm2, %v704_v57, %v697_v61  ;;  %v708_v4 = vrot.slane %v707_v62, 2  ;;  %v684_v6 = vmax.f32 %v648_v63, 0.0 }
 0x1db   : > { %v716_v7 = vmax.f32 %v714_v58, %v715_v0  ;;  %v726_v8 = vmax.f32 %v685_v1, %v686_v2 }
 0x1dc   : > { %v709_v9 = vmax.f32 %v707_v62, %v708_v4  ;;  %v719_v10 = vmax.f32 %v683_v5, %v684_v6  ;;  %v1017_v12 = vpop.f32.mrb[8].mxu1 }
 0x1dd   : > { %v717_v13 = vrot.slane %v716_v7, 1  ;;  %v727_v14 = vrot.slane %v726_v8, 4  ;;  %v669_v15 = vadd.f32 %v1017_v12, %v1206_v11  ;;  %v660_v16 = vpop.f32.mrb[9].mxu1 }
 0x1de   : > { %v710_v17 = vrot.slane %v709_v9, 1  ;;  %v720_v18 = vrot.slane %v719_v10, 4  ;;  %v661_v19 = vadd.f32 %v1206_v11, %v660_v16  ;;  %v1018_v20 = vpop.f32.mrb[10].mxu1 }
 0x1df   : > { %v728_v21 = vmax.f32 %v726_v8, %v727_v14  ;;  %v672_v22 = vadd.f32 %v1018_v20, %v1206_v11  ;;  %v663_v23 = vpop.f32.mrb[11].mxu1  ;;  %v718_v27 = vmax.f32 %v716_v7, %v717_v13  ;;  %v689_v29 = vmax.f32 %v669_v15, 0.0 }
 0x1e0   : > { %v711_v24 = vmax.f32 %v709_v9, %v710_v17  ;;  %v721_v25 = vmax.f32 %v719_v10, %v720_v18  ;;  %v664_v26 = vadd.f32 %v1206_v11, %v663_v23  ;;  %v687_v32 = vmax.f32 %v661_v19, 0.0 }
 0x1e1   : > { %v729_v28 = vrot.slane %v728_v21, 2  ;;  %v690_v30 = vmax.f32 %v672_v22, 0.0 }
 0x1e2   : > { %v722_v31 = vrot.slane %v721_v25, 2  ;;  %v688_v33 = vmax.f32 %v664_v26, 0.0  ;;  %v759_v34 = vsel %vm758_vm3, %v711_v24, %v757_v3 }
 0x1e3   : > { %v730_v35 = vmax.f32 %v728_v21, %v729_v28  ;;  %v740_v36 = vmax.f32 %v689_v29, %v690_v30  ;;  %v761_v37 = vsel %vm760_vm4, %v718_v27, %v759_v34 }
 0x1e4   : > { %v723_v38 = vmax.f32 %v721_v25, %v722_v31  ;;  %v733_v39 = vmax.f32 %v687_v32, %v688_v33 }
 0x1e5   : > { %v731_v40 = vrot.slane %v730_v35, 1  ;;  %v741_v41 = vrot.slane %v740_v36, 4 }
 0x1e6   : > { %v724_v42 = vrot.slane %v723_v38, 1  ;;  %v734_v43 = vrot.slane %v733_v39, 4 }
 0x1e7   : > { %v742_v44 = vmax.f32 %v740_v36, %v741_v41  ;;  %v732_v46 = vmax.f32 %v730_v35, %v731_v40 }
 0x1e8   : > { %v725_v11 = vmax.f32 %v723_v38, %v724_v42  ;;  %v735_v45 = vmax.f32 %v733_v39, %v734_v43 }
 0x1e9   : > { %v743_v47 = vrot.slane %v742_v44, 2 }
 0x1ea   : > { %v736_v48 = vrot.slane %v735_v45, 2  ;;  %v763_v49 = vsel %vm762_vm5, %v725_v11, %v761_v37 }
 0x1eb   : > { %v744_v50 = vmax.f32 %v742_v44, %v743_v47  ;;  %v765_v51 = vsel %vm764_vm6, %v732_v46, %v763_v49 }
 0x1ec   : > { %v737_v52 = vmax.f32 %v735_v45, %v736_v48 }
 0x1ed   : > { %v745_v53 = vrot.slane %v744_v50, 1 }
 0x1ee   : > { %v738_v54 = vrot.slane %v737_v52, 1 }
 0x1ef   : > { %v746_v56 = vmax.f32 %v744_v50, %v745_v53 }
 0x1f0   : > { %v739_v55 = vmax.f32 %v737_v52, %v738_v54 }
 0x1f2   : > { %v767_v57 = vsel %vm766_vm7, %v739_v55, %v765_v51 }
 0x1f3   : > { %v769_v58 = vsel %vm768_vm8, %v746_v56, %v767_v57 }
 0x1f4   : > { %v771_v59 = vmax.f32 %v769_v58, 0.0 }
 0x1f6   : > { %777 = vxpose.xlu0.b32.start.end [1/1] (short) (narrow) %v771_v59, 32 }
 0x276   : > { %v793_v60 = vpop.trf.xlu0 }
 0x277   : > { %809 = vst.msk [vmem:[%s286_s30] sm:$0xff] %vm357_vm1, %v793_v60 }
 0x27a   : > { %v794_v61 = vpop.trf.xlu0 }
 0x27b   : > { %810 = vst.msk [vmem:[%s286_s30 + $0x8] sm:$0xff] %vm357_vm1, %v794_v61 }
 0x27e   : > { %v795_v62 = vpop.trf.xlu0 }
 0x27f   : > { %811 = vst.msk [vmem:[%s286_s30 + $0x10] sm:$0xff] %vm357_vm1, %v795_v62 }
 0x282   : > { %v796_v63 = vpop.trf.xlu0 }
 0x283   : > { %812 = vst.msk [vmem:[%s286_s30 + $0x18] sm:$0xff] %vm357_vm1, %v796_v63 }
 0x284 PF: > { %s15_s20 = sadd.s32 1, %s1099_s20   ;;  %s1247_s18 = smov %s1095_s19 }
 0x285   : > { %p12_p5 = scmp.ge.s32.totalorder %s15_s20, 4   ;;  %s1248_s19 = smov %s1250_s21 }
 0x287   :  { %14 = sbr.rel (!%p12_p5) target bundleno = 2 (0x2), region = 78 }

</bundles_post_ra>
